<compile_context>
chip_gen: v5e
topology: v5e:2x2
jax: 0.10.0
libtpu: 0.0.40
codegen_flags: <defaults>
</compile_context>

<pallas_src>
import jax
import jax.numpy as jnp
from jax.experimental import pallas as pl
from jax.experimental.pallas import tpu as pltpu

D_MODEL = 128
TEMPERATURE = 0.07
BASE_TEMPERATURE = 0.07
LN_EPS = 1e-5
INV_SQRT2 = 0.7071067811865476
MRM_IGNORE = -100.0  # sentinel written exactly by mask_fn; exact float compare is intentional


def _round_up(x, m):
    return ((x + m - 1) // m) * m


# --------------------------------------------------------------------------
# Kernel 1 (fused): regressor head  Linear(D,D) -> GELU -> LayerNorm(D) -> Linear(D,1)
#                   + masked-MRM MSE partial sums (sum of squared error, count of valid)
# --------------------------------------------------------------------------
def _fused_regressor_mrm_kernel(ctx_ref, tgt_ref, w1_ref, b1_ref, g_ref, beta_ref,
                                w2_ref, b2_ref, se_ref, cnt_ref):
    # Linear(D,D): bf16 operands on the MXU, f32 accumulation
    x = ctx_ref[...]                                                     # (tm, D) bf16
    h = jnp.dot(x, w1_ref[...], preferred_element_type=jnp.float32)      # (tm, D) f32
    h = h + b1_ref[...]
    # exact GELU (erf form) == torch.nn.GELU(), kept in f32
    h = 0.5 * h * (1.0 + jax.lax.erf(h * INV_SQRT2))
    # LayerNorm(D, eps=1e-5), f32
    mu = jnp.mean(h, axis=-1, keepdims=True)
    var = jnp.mean((h - mu) ** 2, axis=-1, keepdims=True)
    hn = (h - mu) * jax.lax.rsqrt(var + LN_EPS)
    hn = hn * g_ref[...] + beta_ref[...]
    # Linear(D,1) as a VPU multiply + lane reduction (XLU) instead of an N=1 MXU matmul
    pred = jnp.sum(hn * w2_ref[...], axis=-1, keepdims=True) + b2_ref[0, 0]   # (tm, 1)
    # fused masked-MRM MSE partials for this tile
    tgt = tgt_ref[...]                                                   # (tm, 1)
    valid = (tgt != MRM_IGNORE).astype(jnp.float32)
    diff = (pred - tgt) * valid
    se11 = jnp.sum(diff * diff, keepdims=True)                           # (1, 1)
    cnt11 = jnp.sum(valid, keepdims=True)                                # (1, 1)
    # broadcast scalars to a full (8,128) block -> unmasked lane-dense stores
    se_ref[...] = jnp.broadcast_to(se11, se_ref.shape)
    cnt_ref[...] = jnp.broadcast_to(cnt11, cnt_ref.shape)


def fused_regressor_mrm_loss(ctx_flat, tgt_flat, params, tm=512):
    """regressor(ctx) fused with the masked-MRM MSE reduction.

    Returns mean((pred - tgt)^2) over entries with tgt != -100 (guarded against 0 valid).
    """
    M, D = ctx_flat.shape
    w1, b1, g, beta, w2_row, b2 = params

    # keep >= 2 grid steps (v7x has 2 TensorCores) while capping the tile at `tm` rows
    tm = max(8, min(tm, _round_up(pl.cdiv(M, 2), 8)))
    grid_len = max(2, pl.cdiv(M, tm))
    Mp = grid_len * tm

    ctx_p = jnp.pad(ctx_flat, ((0, Mp - M), (0, 0))).astype(jnp.bfloat16)
    tgt_p = jnp.pad(tgt_flat.reshape(M, 1), ((0, Mp - M), (0, 0)),
                    constant_values=MRM_IGNORE)

    out_se, out_cnt = pl.pallas_call(
        _fused_regressor_mrm_kernel,
        out_shape=(jax.ShapeDtypeStruct((grid_len * 8, 128), jnp.float32),
                   jax.ShapeDtypeStruct((grid_len * 8, 128), jnp.float32)),
        grid=(grid_len,),
        in_specs=[
            pl.BlockSpec((tm, D), lambda i: (i, 0)),              # ctx tile (bf16)
            pl.BlockSpec((tm, 1), lambda i: (i, 0)),              # targets (-100 = ignore)
            pl.BlockSpec((D, D), lambda i: (0, 0)),               # w1 (bf16)
            pl.BlockSpec((1, D), lambda i: (0, 0)),               # b1
            pl.BlockSpec((1, D), lambda i: (0, 0)),               # LN gamma
            pl.BlockSpec((1, D), lambda i: (0, 0)),               # LN beta
            pl.BlockSpec((1, D), lambda i: (0, 0)),               # w2 row (Linear(D,1).weight)
            pl.BlockSpec(memory_space=pltpu.MemorySpace.SMEM),    # b2 scalar in SMEM
        ],
        out_specs=(pl.BlockSpec((8, 128), lambda i: (i, 0)),
                   pl.BlockSpec((8, 128), lambda i: (i, 0))),
        compiler_params=pltpu.CompilerParams(
            dimension_semantics=("parallel",),
            vmem_limit_bytes=32 * 1024 * 1024),
    )(ctx_p, tgt_p, w1.astype(jnp.bfloat16), b1, g, beta, w2_row, b2)

    se_total = jnp.sum(out_se[::8, 0])
    cnt_total = jnp.sum(out_cnt[::8, 0])
    # guard: a batch with zero masked targets would otherwise be 0/0 -> NaN
    return se_total / jnp.maximum(cnt_total, 1.0)


# --------------------------------------------------------------------------
# Kernel 2: SupConLoss (n_views=1, contrast_mode='all'), features (B,D), labels (B,)
# --------------------------------------------------------------------------
def _supcon_kernel(feat_ref, lab_col_ref, lab_row_ref, out_ref):
    f = feat_ref[...]                                                   # (B, D)
    B = f.shape[0]

    # F.normalize(p=2, dim=1) with eps clamp
    norm = jnp.sqrt(jnp.sum(f * f, axis=-1, keepdims=True))
    f = f / jnp.maximum(norm, 1e-12)

    sim = jax.lax.dot_general(f, f, (((1,), (1,)), ((), ())),
                              preferred_element_type=jnp.float32) / TEMPERATURE
    # row-max subtraction; forward value matches logits_max.detach() exactly
    logits = sim - jnp.max(sim, axis=-1, keepdims=True)

    row = jax.lax.broadcasted_iota(jnp.int32, (B, B), 0)
    col = jax.lax.broadcasted_iota(jnp.int32, (B, B), 1)
    logits_mask = (row != col).astype(jnp.float32)                      # ones - eye
    # integer label comparison (avoids fragile float equality)
    pos_mask = (lab_col_ref[...] == lab_row_ref[...]).astype(jnp.float32) * logits_mask

    exp_logits = jnp.exp(logits) * logits_mask
    log_prob = logits - jnp.log(jnp.sum(exp_logits, axis=-1, keepdims=True))

    mask_pos_pairs = jnp.sum(pos_mask, axis=-1, keepdims=True)
    mask_pos_pairs = jnp.where(mask_pos_pairs < 1e-6, 1.0, mask_pos_pairs)
    mean_log_prob_pos = jnp.sum(pos_mask * log_prob, axis=-1, keepdims=True) / mask_pos_pairs

    loss = -(TEMPERATURE / BASE_TEMPERATURE) * mean_log_prob_pos        # (B, 1)
    out_ref[...] = jnp.sum(loss, keepdims=True) / B


def supcon_pallas(features, labels):
    # TODO(synk): B is the small contrastive batch; if B grows large, tile the (B,B) similarity.
    B = features.shape[0]
    lab_col = labels.astype(jnp.int32).reshape(B, 1)
    lab_row = labels.astype(jnp.int32).reshape(1, B)
    return pl.pallas_call(
        _supcon_kernel,
        out_shape=jax.ShapeDtypeStruct((1, 1), jnp.float32),
        in_specs=[pl.BlockSpec(memory_space=pltpu.MemorySpace.VMEM)] * 3,
        out_specs=pl.BlockSpec(memory_space=pltpu.MemorySpace.VMEM),
    )(features, lab_col, lab_row)[0, 0]


# --------------------------------------------------------------------------
# Plain-JAX glue: masking, stand-in encoder, parameter init
# --------------------------------------------------------------------------
def make_masks(key, pheno_group_mask, mrm_probability):
    # Per-unique-group numpy loop in the original reduces to per-element Bernoulli(p).
    return jax.random.bernoulli(key, mrm_probability, pheno_group_mask.shape)


def mask_fn(input_seq, input_ids, pad_token_id, targets, masked_indices):
    masked_indices = jnp.where(input_ids == pad_token_id, False, masked_indices)
    masked_indices = jnp.where(input_seq == 0.0, False, masked_indices)
    targets = jnp.where(masked_indices, targets, MRM_IGNORE)
    input_seq = jnp.where(masked_indices, 0.0, input_seq)
    return input_seq, targets, masked_indices


def standin_encoder(input_ids, feature_seq_input, source_num, masked_indices, enc_params):
    # TODO(synk): stand-in for HyenaModel(**hyena_config, use_head=False)
    tok_emb, feat_proj, src_emb, eos_emb = enc_params
    B, Lt = input_ids.shape
    D = tok_emb.shape[-1]
    tok = tok_emb[input_ids]                                            # (B, Lt, D)
    body = tok.at[:, 1:, :].add(feature_seq_input[..., None] * feat_proj[None, None, :])
    src = src_emb[source_num][:, None, :]                               # (B, 1, D)
    ctx = body + src
    eos = jnp.broadcast_to(eos_emb[None, None, :], (B, 1, D)) + src
    return jnp.concatenate([ctx, eos], axis=1)                          # (B, Lt+1, D)


def init_regressor_params(key, d):
    k1, k2 = jax.random.split(key)
    w1 = jax.random.normal(k1, (d, d), jnp.float32) * (1.0 / jnp.sqrt(d))
    b1 = jnp.zeros((1, d), jnp.float32)
    g = jnp.ones((1, d), jnp.float32)
    beta = jnp.zeros((1, d), jnp.float32)
    w2_row = jax.random.normal(k2, (1, d), jnp.float32) * (1.0 / jnp.sqrt(d))  # Linear(D,1).weight
    b2 = jnp.zeros((1, 1), jnp.float32)
    return (w1, b1, g, beta, w2_row, b2)


def hyena_morph_forward(input_ids, feature_seq, pheno_group_mask, source_num, labels,
                        reg_params, enc_params, mask_key,
                        mrm_probability=0.3, pad_token_id=0):
    feature_seq_input = feature_seq.astype(jnp.float32)
    feature_seq_target = feature_seq.astype(jnp.float32)
    rna_ids = input_ids[:, 1:]

    # original draws p ~ U(0.05, mrm_probability) with numpy RNG; fixed deterministically
    p = 0.5 * (mrm_probability - 0.05) + 0.05
    masked_indices = make_masks(mask_key, pheno_group_mask, p)
    feature_seq_input, feature_seq_target, masked_indices = mask_fn(
        feature_seq_input, rna_ids, pad_token_id, feature_seq_target, masked_indices)

    context_vector = standin_encoder(input_ids, feature_seq_input, source_num,
                                     masked_indices, enc_params)        # (B, Lc, D)
    B, Lc, D = context_vector.shape

    # Full-sequence targets: positions 0 and Lc-1 carry the ignore sentinel, so the fused
    # kernel's masked MSE over all B*Lc rows equals the original loss over [:, 1:-1].
    tgt_full = jnp.full((B, Lc), MRM_IGNORE, jnp.float32)
    tgt_full = tgt_full.at[:, 1:-1].set(feature_seq_target)

    ctx_flat = context_vector.reshape(B * Lc, D)
    mrm_loss = fused_regressor_mrm_loss(ctx_flat, tgt_full.reshape(-1), reg_params)
    suploss = supcon_pallas(context_vector[:, 0, :], labels)
    return mrm_loss + suploss


# --------------------------------------------------------------------------
if __name__ == "__main__":
    key = jax.random.PRNGKey(0)
    B, F, D = 4, 8, D_MODEL
    Lt = F + 1          # input_ids: [BOS] + F feature tokens
    vocab = 16
    pad_token_id = 0
    k1, k2, k3, k4, k5, k6, k7, k8, k9 = jax.random.split(key, 9)

    input_ids = jax.random.randint(k1, (B, Lt), 1, vocab)                       # no pads
    feature_seq = jax.random.uniform(k2, (B, F), jnp.float32, minval=0.1, maxval=1.0)
    pheno_group_mask = jax.random.randint(k3, (B, F), 0, 3)
    source_num = jax.random.randint(k4, (B,), 0, 2)
    labels = jnp.array([0, 1, 0, 1], dtype=jnp.int32)

    reg_params = init_regressor_params(k5, D)
    tok_emb = 0.02 * jax.random.normal(k6, (vocab, D), jnp.float32)
    feat_proj = 0.1 * jax.random.normal(k7, (D,), jnp.float32)
    src_emb = 0.02 * jax.random.normal(k8, (2, D), jnp.float32)
    eos_emb = jnp.zeros((D,), jnp.float32)
    enc_params = (tok_emb, feat_proj, src_emb, eos_emb)

    total_loss = hyena_morph_forward(input_ids, feature_seq, pheno_group_mask,
                                     source_num, labels, reg_params, enc_params,
                                     mask_key=k9, mrm_probability=0.3,
                                     pad_token_id=pad_token_id)
    total_loss = jax.block_until_ready(total_loss)
    assert total_loss.shape == ()
    assert bool(jnp.isfinite(total_loss))
    print("KERNEL_OK")
</pallas_src>

<mosaic_0001>
module attributes {stable_mosaic.version = 11 : i64} {
  func.func @_fused_regressor_mrm_kernel(%arg0: i32, %arg1: memref<24x128xbf16, #tpu.memory_space<vmem>>, %arg2: memref<24x1xf32, #tpu.memory_space<vmem>>, %arg3: memref<128x128xbf16, #tpu.memory_space<vmem>>, %arg4: memref<1x128xf32, #tpu.memory_space<vmem>>, %arg5: memref<1x128xf32, #tpu.memory_space<vmem>>, %arg6: memref<1x128xf32, #tpu.memory_space<vmem>>, %arg7: memref<1x128xf32, #tpu.memory_space<vmem>>, %arg8: memref<1x1xf32, #tpu.memory_space<smem>>, %arg9: memref<8x128xf32, #tpu.memory_space<vmem>>, %arg10: memref<8x128xf32, #tpu.memory_space<vmem>>) attributes {dimension_semantics = [#tpu.dimension_semantics<parallel>], iteration_bounds = array<i64: 2>, scalar_prefetch = 0 : i64, scratch_operands = 0 : i64, tpu.core_type = #tpu.core_type<tc>, window_params = [{transform_indices = @transform_0, window_bounds = array<i64: 24, 128>}, {transform_indices = @transform_1, window_bounds = array<i64: 24, 1>}, {pipeline_mode = #tpu.pipeline_mode<synchronous>, transform_indices = @transform_2, window_bounds = array<i64: 128, 128>}, {pipeline_mode = #tpu.pipeline_mode<synchronous>, transform_indices = @transform_3, window_bounds = array<i64: 1, 128>}, {pipeline_mode = #tpu.pipeline_mode<synchronous>, transform_indices = @transform_4, window_bounds = array<i64: 1, 128>}, {pipeline_mode = #tpu.pipeline_mode<synchronous>, transform_indices = @transform_5, window_bounds = array<i64: 1, 128>}, {pipeline_mode = #tpu.pipeline_mode<synchronous>, transform_indices = @transform_6, window_bounds = array<i64: 1, 128>}, {transform_indices = @transform_7, window_bounds = array<i64: 1, 1>}, {transform_indices = @transform_8, window_bounds = array<i64: 8, 128>}, {transform_indices = @transform_9, window_bounds = array<i64: 8, 128>}]} {
    %c0 = arith.constant 0 : index
    %c0_0 = arith.constant 0 : index
    %0 = vector.load %arg1[%c0, %c0_0] : memref<24x128xbf16, #tpu.memory_space<vmem>>, vector<24x128xbf16>
    %c0_1 = arith.constant 0 : index
    %c0_2 = arith.constant 0 : index
    %1 = vector.load %arg3[%c0_1, %c0_2] : memref<128x128xbf16, #tpu.memory_space<vmem>>, vector<128x128xbf16>
    %cst = arith.constant dense<0.000000e+00> : vector<24x128xf32>
    %2 = tpu.matmul %0, %1, %cst {dimension_numbers = #tpu.dot_dimension_numbers<[1], [0], [0], [1], [0, 0, 1, 1], [], []>} : vector<24x128xbf16>, vector<128x128xbf16>, vector<24x128xf32> -> vector<24x128xf32>
    %c0_3 = arith.constant 0 : index
    %c0_4 = arith.constant 0 : index
    %3 = vector.load %arg4[%c0_3, %c0_4] : memref<1x128xf32, #tpu.memory_space<vmem>>, vector<1x128xf32>
    %4 = vector.broadcast %3 : vector<1x128xf32> to vector<24x128xf32>
    %5 = arith.addf %2, %4 : vector<24x128xf32>
    %cst_5 = arith.constant 5.000000e-01 : f32
    %6 = vector.broadcast %cst_5 : f32 to vector<24x128xf32>
    %7 = arith.mulf %6, %5 : vector<24x128xf32>
    %cst_6 = arith.constant 0.707106769 : f32
    %8 = vector.broadcast %cst_6 : f32 to vector<24x128xf32>
    %9 = arith.mulf %5, %8 : vector<24x128xf32>
    %10 = math.erf %9 : vector<24x128xf32>
    %cst_7 = arith.constant 1.000000e+00 : f32
    %11 = vector.broadcast %cst_7 : f32 to vector<24x128xf32>
    %12 = arith.addf %11, %10 : vector<24x128xf32>
    %13 = arith.mulf %7, %12 : vector<24x128xf32>
    %cst_8 = arith.constant dense<0.000000e+00> : vector<24xf32>
    %14 = vector.multi_reduction <add>, %13, %cst_8 [1] : vector<24x128xf32> to vector<24xf32>
    %15 = vector.shape_cast %14 : vector<24xf32> to vector<24x1xf32>
    %cst_9 = arith.constant 1.280000e+02 : f32
    %16 = vector.broadcast %cst_9 : f32 to vector<24x1xf32>
    %17 = arith.divf %15, %16 : vector<24x1xf32>
    %18 = vector.broadcast %17 : vector<24x1xf32> to vector<24x128xf32>
    %19 = arith.subf %13, %18 : vector<24x128xf32>
    %20 = arith.mulf %19, %19 : vector<24x128xf32>
    %cst_10 = arith.constant dense<0.000000e+00> : vector<24xf32>
    %21 = vector.multi_reduction <add>, %20, %cst_10 [1] : vector<24x128xf32> to vector<24xf32>
    %22 = vector.shape_cast %21 : vector<24xf32> to vector<24x1xf32>
    %cst_11 = arith.constant 1.280000e+02 : f32
    %23 = vector.broadcast %cst_11 : f32 to vector<24x1xf32>
    %24 = arith.divf %22, %23 : vector<24x1xf32>
    %25 = vector.broadcast %17 : vector<24x1xf32> to vector<24x128xf32>
    %26 = arith.subf %13, %25 : vector<24x128xf32>
    %cst_12 = arith.constant 9.99999974E-6 : f32
    %27 = vector.broadcast %cst_12 : f32 to vector<24x1xf32>
    %28 = arith.addf %24, %27 : vector<24x1xf32>
    %29 = math.rsqrt %28 : vector<24x1xf32>
    %30 = vector.broadcast %29 : vector<24x1xf32> to vector<24x128xf32>
    %31 = arith.mulf %26, %30 : vector<24x128xf32>
    %c0_13 = arith.constant 0 : index
    %c0_14 = arith.constant 0 : index
    %32 = vector.load %arg5[%c0_13, %c0_14] : memref<1x128xf32, #tpu.memory_space<vmem>>, vector<1x128xf32>
    %33 = vector.broadcast %32 : vector<1x128xf32> to vector<24x128xf32>
    %34 = arith.mulf %31, %33 : vector<24x128xf32>
    %c0_15 = arith.constant 0 : index
    %c0_16 = arith.constant 0 : index
    %35 = vector.load %arg6[%c0_15, %c0_16] : memref<1x128xf32, #tpu.memory_space<vmem>>, vector<1x128xf32>
    %36 = vector.broadcast %35 : vector<1x128xf32> to vector<24x128xf32>
    %37 = arith.addf %34, %36 : vector<24x128xf32>
    %c0_17 = arith.constant 0 : index
    %c0_18 = arith.constant 0 : index
    %38 = vector.load %arg7[%c0_17, %c0_18] : memref<1x128xf32, #tpu.memory_space<vmem>>, vector<1x128xf32>
    %39 = vector.broadcast %38 : vector<1x128xf32> to vector<24x128xf32>
    %40 = arith.mulf %37, %39 : vector<24x128xf32>
    %cst_19 = arith.constant dense<0.000000e+00> : vector<24xf32>
    %41 = vector.multi_reduction <add>, %40, %cst_19 [1] : vector<24x128xf32> to vector<24xf32>
    %42 = vector.shape_cast %41 : vector<24xf32> to vector<24x1xf32>
    %c0_20 = arith.constant 0 : index
    %c0_21 = arith.constant 0 : index
    %43 = memref.load %arg8[%c0_20, %c0_21] : memref<1x1xf32, #tpu.memory_space<smem>>
    %44 = vector.broadcast %43 : f32 to vector<24x1xf32>
    %45 = arith.addf %42, %44 : vector<24x1xf32>
    %c0_22 = arith.constant 0 : index
    %c0_23 = arith.constant 0 : index
    %46 = vector.load %arg2[%c0_22, %c0_23] : memref<24x1xf32, #tpu.memory_space<vmem>>, vector<24x1xf32>
    %cst_24 = arith.constant -1.000000e+02 : f32
    %47 = vector.broadcast %cst_24 : f32 to vector<24x1xf32>
    %48 = arith.cmpf one, %46, %47 : vector<24x1xf32>
    %49 = arith.extui %48 : vector<24x1xi1> to vector<24x1xi32>
    %50 = arith.sitofp %49 : vector<24x1xi32> to vector<24x1xf32>
    %51 = arith.subf %45, %46 : vector<24x1xf32>
    %52 = arith.mulf %51, %50 : vector<24x1xf32>
    %53 = arith.mulf %52, %52 : vector<24x1xf32>
    %54 = vector.shape_cast %53 : vector<24x1xf32> to vector<1x24x1xf32>
    %cst_25 = arith.constant dense<0.000000e+00> : vector<1xf32>
    %55 = vector.multi_reduction <add>, %54, %cst_25 [1, 2] : vector<1x24x1xf32> to vector<1xf32>
    %56 = vector.shape_cast %55 : vector<1xf32> to vector<1x1x1xf32>
    %57 = vector.extract %56[0, 0, 0] : f32 from vector<1x1x1xf32>
    %58 = vector.broadcast %57 : f32 to vector<1x1xf32>
    %59 = vector.shape_cast %50 : vector<24x1xf32> to vector<1x24x1xf32>
    %cst_26 = arith.constant dense<0.000000e+00> : vector<1xf32>
    %60 = vector.multi_reduction <add>, %59, %cst_26 [1, 2] : vector<1x24x1xf32> to vector<1xf32>
    %61 = vector.shape_cast %60 : vector<1xf32> to vector<1x1x1xf32>
    %62 = vector.extract %61[0, 0, 0] : f32 from vector<1x1x1xf32>
    %63 = vector.broadcast %62 : f32 to vector<1x1xf32>
    %64 = vector.shape_cast %58 : vector<1x1xf32> to vector<1x1xf32>
    %65 = vector.broadcast %64 : vector<1x1xf32> to vector<8x128xf32>
    %c0_27 = arith.constant 0 : index
    %c0_28 = arith.constant 0 : index
    %66 = vector.load %arg9[%c0_27, %c0_28] : memref<8x128xf32, #tpu.memory_space<vmem>>, vector<8x128xf32>
    tpu.vector_store %arg9[%c0_27, %c0_28], %65 {strides = array<i32>} : memref<8x128xf32, #tpu.memory_space<vmem>>, vector<8x128xf32>,
    %67 = vector.shape_cast %63 : vector<1x1xf32> to vector<1x1xf32>
    %68 = vector.broadcast %67 : vector<1x1xf32> to vector<8x128xf32>
    %c0_29 = arith.constant 0 : index
    %c0_30 = arith.constant 0 : index
    %69 = vector.load %arg10[%c0_29, %c0_30] : memref<8x128xf32, #tpu.memory_space<vmem>>, vector<8x128xf32>
    tpu.vector_store %arg10[%c0_29, %c0_30], %68 {strides = array<i32>} : memref<8x128xf32, #tpu.memory_space<vmem>>, vector<8x128xf32>,
    return
  }
  func.func @transform_0(%arg0: i32) -> (i32, i32) {
    %c0_i32 = arith.constant 0 : i32
    %c0_i32_0 = arith.constant 0 : i32
    return %arg0, %c0_i32 : i32, i32
  }
  func.func @transform_1(%arg0: i32) -> (i32, i32) {
    %c0_i32 = arith.constant 0 : i32
    %c0_i32_0 = arith.constant 0 : i32
    return %arg0, %c0_i32 : i32, i32
  }
  func.func @transform_2(%arg0: i32) -> (i32, i32) {
    %c0_i32 = arith.constant 0 : i32
    %c0_i32_0 = arith.constant 0 : i32
    %c0_i32_1 = arith.constant 0 : i32
    return %c0_i32, %c0_i32_0 : i32, i32
  }
  func.func @transform_3(%arg0: i32) -> (i32, i32) {
    %c0_i32 = arith.constant 0 : i32
    %c0_i32_0 = arith.constant 0 : i32
    %c0_i32_1 = arith.constant 0 : i32
    return %c0_i32, %c0_i32_0 : i32, i32
  }
  func.func @transform_4(%arg0: i32) -> (i32, i32) {
    %c0_i32 = arith.constant 0 : i32
    %c0_i32_0 = arith.constant 0 : i32
    %c0_i32_1 = arith.constant 0 : i32
    return %c0_i32, %c0_i32_0 : i32, i32
  }
  func.func @transform_5(%arg0: i32) -> (i32, i32) {
    %c0_i32 = arith.constant 0 : i32
    %c0_i32_0 = arith.constant 0 : i32
    %c0_i32_1 = arith.constant 0 : i32
    return %c0_i32, %c0_i32_0 : i32, i32
  }
  func.func @transform_6(%arg0: i32) -> (i32, i32) {
    %c0_i32 = arith.constant 0 : i32
    %c0_i32_0 = arith.constant 0 : i32
    %c0_i32_1 = arith.constant 0 : i32
    return %c0_i32, %c0_i32_0 : i32, i32
  }
  func.func @transform_7(%arg0: i32) -> (i32, i32) {
    %c0_i32 = arith.constant 0 : i32
    %c0_i32_0 = arith.constant 0 : i32
    %c0_i32_1 = arith.constant 0 : i32
    return %c0_i32, %c0_i32_0 : i32, i32
  }
  func.func @transform_8(%arg0: i32) -> (i32, i32) {
    %c0_i32 = arith.constant 0 : i32
    %c0_i32_0 = arith.constant 0 : i32
    return %arg0, %c0_i32 : i32, i32
  }
  func.func @transform_9(%arg0: i32) -> (i32, i32) {
    %c0_i32 = arith.constant 0 : i32
    %c0_i32_0 = arith.constant 0 : i32
    return %arg0, %c0_i32 : i32, i32
  }
}

</mosaic_0001>

<bundles_post_ra>
// kernel: tpu_custom_call.1
= control target key start
LH: loop header
LB: loop body
LE: loop exit
PB: predicated region body
PF: predicated region fallthrough
CT: control target
= control target key end

     0   :  { %s1446_s0 = inlined_call_operand.vmem [shape: bf16[48,128], index: 0, kind: input, shape index: {}]   ;;  %s1447_s1 = inlined_call_operand.vmem [shape: f32[48,1], index: 1, kind: input, shape index: {}]   ;;  %s1448_s2 = inlined_call_operand.hbm [shape: bf16[128,128], index: 2, kind: input, shape index: {}]   ;;  %s1449_s3 = inlined_call_operand.vmem [shape: f32[1,128], index: 3, kind: input, shape index: {}]   ;;  %s1450_s4 = inlined_call_operand.vmem [shape: f32[1,128], index: 4, kind: input, shape index: {}]   ;;  %s1451_s5 = inlined_call_operand.vmem [shape: f32[1,128], index: 5, kind: input, shape index: {}]   ;;  %s1452_s6 = inlined_call_operand.vmem [shape: f32[1,128], index: 6, kind: input, shape index: {}]   ;;  %s1453_s7 = inlined_call_operand.<no memory space> [shape: f32[1,1], index: 7, kind: input, shape index: {}]   ;;  %s1454_s8 = inlined_call_operand.hbm [shape: f32[16,128], index: 8, kind: output, shape index: {0}]   ;;  %s1455_s9 = inlined_call_operand.hbm [shape: f32[16,128], index: 9, kind: output, shape index: {1}]  }
   0x1   :  { %1456 = sst [smem:[#allocation12_spill]] %s1446_s0 }
   0x2   :  { %1457 = sst [smem:[#allocation13_spill]] %s1447_s1 }
   0x3   :  { %15 = sst [smem:[#allocation2]] %s1453_s7 }
   0x4   :  { %16 = vsyncpa [#allocation4], 0 }
   0x5   :  { %17 = vsyncpa [#allocation5], 0 }
   0x6   :  { %19 = vsyncpa [#allocation5 + $0x1], 0 }
   0x7   :  { %20 = vsyncpa [#allocation8], 0 }
   0x8   :  { %22 = vsyncpa [#allocation8 + $0x1], 0  ;;  %s1263_s11 = smov 0   ;;  %s1265_s12 = smov 0  }
   0x9   :  { %s1267_s13 = smov 0   ;;  %s1269_s14 = smov 0  }
   0xa LB: > { %s1284_s7 = sadd.s32 4294967295, %s1203_s14   ;;  %s919_s15 = sadd.s32 4294967294, %s1203_s14   ;;  %s1203_s14 = sphi %s1269_s14, %s1465_s14   ;;  %s1199_s13 = sphi %s1267_s13, %s1464_s13   ;;  %s1195_s12 = sphi %s1265_s12, %s1463_s12   ;;  %s1191_s11 = sphi %s1263_s11, %s1462_s11  }
   0xb   : > { %s1288_s16 = sadd.s32 1, %s1203_s14   ;;  %s213_s17 = sadd.s32 1, %s1199_s13 }
   0xc   : > { %s210_s18 = ssub.s32 %s1203_s14, %s1288_s16  ;;  %p223_p0 = scmp.ne.s32.totalorder %s1199_s13, %s1195_s12 }
   0xd   : > { %p211_p1 = scmp.eq.s32.totalorder %s210_s18, 0  ;;  %p224_p2 = scmp.eq.s32.totalorder %s1284_s7, 1 }
   0xe   : > { %p229_p3 = scmp.ne.s32.totalorder %s1195_s12, %s1191_s11  ;;  %p230_p4 = scmp.eq.s32.totalorder %s919_s15, 1 }
   0xf   : > { %s1299_s19 = scalar_select %p211_p1, %s1199_s13, %s213_s17  }
  0x10   : > { %p1301_p5 = por %p224_p2, %p223_p0  ;;  %p1305_p6 = por %p230_p4, %p229_p3 }
  0x11   : > { %p920_p7 = scmp.ge.s32.totalorder %s1203_s14, 1  ;;  %p263_p8 = scmp.lt.s32.totalorder %s1203_s14, 3 }
  0x12   : > { %p1017_p9 = scmp.eq.s32.totalorder %s1284_s7, 0  ;;  %s274_s24 = sshll.u32 %s1448_s2, 4  ;;  %s275_s24 = int_to_ptr.hbm [resolvable:$true] %s274_s24 }
  0x13   : > { %p264_p10 = pnand %p920_p7, %p263_p8  ;;  %s1205_s25 = smov [#allocation3]  }
  0x14   : > { %s276_s26 = sshll.u32 %s1205_s25, 4  ;;  %s1206_s27 = smov 64   ;;  %s277_s26 = int_to_ptr.vmem [resolvable:$true] %s276_s26 }
  0x15   : > { %p1006_p11 = pneg %p264_p10  ;;  %s1207_s28 = smov 4  }
  0x16   : > { %325 = sbr.rel (%p264_p10) target bundleno = 847 (0x34f), region = 52 }
  0x17   : > { %p1007_p12 = pnand %p1017_p9, %p1006_p11 }
  0x19   : > { %1009 = dma.hbm_to_vmem [thread:$0]  (!%p1007_p12), %s275_s24, 1024, %s277_s26, [#allocation4], %s1206_s27, %s1206_s27, %s1207_s28  }
  0x1b   : > { %1178 = dma.done.wait (%p1017_p9), [#allocation4], 1024  }
  0x1c   : > { %1180 = vsyncadd (%p1017_p9), [#allocation4], 4294966272  ;;  %v985_v0 = vld [vmem:[#allocation3 + $0x38] sm:$0xff]  ;;  %v984_v1 = vld [vmem:[#allocation3 + $0x30] sm:$0xff]  ;;  %s372_s29 = smul.u32 3, %s1284_s7  ;;  %s1460_s0 = sld [smem:[#allocation12_spill]] }
  0x1d   : > { %465 = vmatpush.bf16.msra.mxu0 %v985_v0  ;;  %986 = vmatpush.bf16.msra.mxu1 %v985_v0  ;;  %v983_v2 = vld [vmem:[#allocation3 + $0x28] sm:$0xff]  ;;  %v982_v3 = vld [vmem:[#allocation3 + $0x20] sm:$0xff]  ;;  %v981_v4 = vld [vmem:[#allocation3 + $0x18] sm:$0xff]  ;;  %s1461_s1 = sld [smem:[#allocation13_spill]]  ;;  %s1390_s18 = sand.u32 1, %s1195_s12  }
  0x1e   : > { %p373_p13 = scmp.lt.s32.totalorder %s372_s29, 5  ;;  %v980_v5 = vld [vmem:[#allocation3 + $0x10] sm:$0xff]  ;;  %v979_v6 = vld [vmem:[#allocation3 + $0x8] sm:$0xff]  ;;  %v978_v9 = vld [vmem:[#allocation3] sm:$0xff]  ;;  %s925_s22 = sshll.u32 %s1390_s18, 3 }
  0x1f   : > { %v1057_v12 = vld [vmem:[%s1449_s3] ss:$0 sm:$0xff]  ;;  %s973_s23 = sshll.u32 %s1284_s7, 3  ;;  %s371_s27 = scalar_lea.vmem [#allocation7], %s925_s22 }
  0x20   : > { %s1467_s29 = smov (!%p373_p13, %s372_s29), 5  ;;  %s784_s26 = scalar_lea.hbm %s1454_s8, %s973_s23 }
  0x21   : > { %466 = vmatpush.bf16.msra.mxu0 %v984_v1  ;;  %987 = vmatpush.bf16.msra.mxu1 %v984_v1  ;;  %s927_s30 = sshll.u32 %s1467_s29, 2  ;;  %s800_s28 = sshll.u32 %s371_s27, 4  ;;  %s1400_s28 = int_to_ptr.vmem [resolvable:$true] %s800_s28 }
  0x22   : > { %s376_s17 = scalar_lea.vmem %s1460_s0, %s927_s30  ;;  %s928_s30 = sshll.u32 %s1467_s29, 3 }
  0x23   : > { %v386_v7 = vld [vmem:[%s376_s17 + $0x8] sm:$0xf]  ;;  %v977_v10 = vld [vmem:[%s376_s17] sm:$0xff]  ;;  %s382_s17 = scalar_lea.vmem %s1461_s1, %s928_s30  ;;  %s709_s29 = sld [smem:[#allocation2]] }
  0x24   : > { %v412_v8 = vunpack.c.l.b16 %v386_v7  ;;  %s798_s15 = scalar_lea.hbm %s1455_s9, %s973_s23  ;;  %s788_s0 = sshll.u32 %s784_s26, 4  ;;  %s789_s0 = int_to_ptr.hbm [resolvable:$true] %s788_s0 }
  0x25   : > { %467 = vmatpush.bf16.msra.mxu0 %v983_v2  ;;  %988 = vmatpush.bf16.msra.mxu1 %v983_v2  ;;  %s802_s1 = sshll.u32 %s798_s15, 4  ;;  %s769_s25 = scalar_lea.sflag [#allocation5], %s1390_s18  ;;  %s1402_s1 = int_to_ptr.hbm [resolvable:$true] %s802_s1 }
  0x26   : > { %v414_v11 = vpack.c.b16 %v412_v8, %v412_v8  ;;  %s1119_s30 = sshra.s32 %s789_s0, 4  ;;  %s1125_s10 = scalar_lea.hbm %s1454_s8, 16  ;;  %s1120_s30 = int_to_ptr.hbm [resolvable:$true] %s1119_s30 }
  0x27   : > { %p1126_p3 = scmp.lt.s32.totalorder %s1120_s30, %s1454_s8 }
  0x29   : > { %468 = vmatpush.bf16.msra.mxu0 %v982_v3  ;;  %989 = vmatpush.bf16.msra.mxu1 %v982_v3 }
  0x2d   : > { %469 = vmatpush.bf16.msra.mxu0 %v981_v4  ;;  %990 = vmatpush.bf16.msra.mxu1 %v981_v4 }
  0x31   : > { %470 = vmatpush.bf16.msra.mxu0 %v980_v5  ;;  %991 = vmatpush.bf16.msra.mxu1 %v980_v5 }
  0x35   : > { %471 = vmatpush.bf16.msra.mxu0 %v979_v6  ;;  %992 = vmatpush.bf16.msra.mxu1 %v979_v6 }
  0x39   : > { %472 = vmatpush.bf16.msra.mxu0 %v978_v9  ;;  %993 = vmatpush.bf16.msra.mxu1 %v978_v9 }
  0x3c   : > { %473 = vmatmul.bf16.vlgmr.msra.gmra.mxu0 %v977_v10  ;;  %478 = vmatmul.bf16.vlgmr.msra.gmra.mxu1 %v414_v11 }
  0xb9   : > { %v474_v13 = vpop.f32.mrf.mxu0  ;;  %v479_v14 = vpop.f32.mrf.mxu1 }
  0xba   : > { %v1331_v15 = vadd.f32 %v1057_v12, %v474_v13  ;;  %v1333_v16 = vadd.f32 %v1057_v12, %v479_v14 }
  0xbc   : > { %v1336_v17 = vmul.f32 0.70710677, %v1331_v15  ;;  %v1339_v18 = vmul.f32 0.70710677, %v1333_v16 }
  0xbe   : > { %v489_v19 = vmul.f32 %v1336_v17, %v1336_v17  ;;  %v569_v20 = vmul.f32 %v1339_v18, %v1339_v18 }
  0xc0   : > { %v490_v21 = vmin.f32 %v489_v19, 16.0  ;;  %v570_v22 = vmin.f32 %v569_v20, 16.0 }
  0xc1   : > { %v476_v23 = vpop.f32.mrf.mxu0  ;;  %v481_v24 = vpop.f32.mrf.mxu1 }
  0xc2   : > { %v491_v25 = vmul.f32 2.1237322e-06, %v490_v21  ;;  %v571_v26 = vmul.f32 2.1237322e-06, %v570_v22  ;;  %v1345_v27 = vadd.f32 %v1057_v12, %v476_v23  ;;  %v582_v28 = vmul.f32 3.8918573e-05, %v570_v22 }
  0xc3   : > { %v502_v29 = vmul.f32 3.8918573e-05, %v490_v21 }
  0xc4   : > { %v492_v30 = vadd.f32 0.00028619796, %v491_v25  ;;  %v572_v31 = vadd.f32 0.00028619796, %v571_v26  ;;  %v1348_v32 = vmul.f32 0.70710677, %v1345_v27 }
  0xc5   : > { %v583_v33 = vadd.f32 0.001143296, %v582_v28  ;;  %v503_v34 = vadd.f32 0.001143296, %v502_v29 }
  0xc6   : > { %v493_v35 = vmul.f32 %v492_v30, %v490_v21  ;;  %v573_v36 = vmul.f32 %v572_v31, %v570_v22  ;;  %v529_v37 = vmul.f32 %v1348_v32, %v1348_v32 }
  0xc7   : > { %v584_v38 = vmul.f32 %v583_v33, %v570_v22  ;;  %v504_v39 = vmul.f32 %v503_v34, %v490_v21 }
  0xc8   : > { %v494_v40 = vadd.f32 0.0036580483, %v493_v35  ;;  %v574_v41 = vadd.f32 0.0036580483, %v573_v36  ;;  %v1352_v42 = vmin.f32 %v529_v37, 16.0 }
  0xc9   : > { %v585_v43 = vadd.f32 0.014752088, %v584_v38  ;;  %v505_v44 = vadd.f32 0.014752088, %v504_v39 }
  0xca   : > { %v531_v45 = vmul.f32 2.1237322e-06, %v1352_v42  ;;  %v542_v48 = vmul.f32 3.8918573e-05, %v1352_v42  ;;  %v495_v49 = vmul.f32 %v494_v40, %v490_v21  ;;  %v575_v50 = vmul.f32 %v574_v41, %v570_v22 }
  0xcb   : > { %v586_v46 = vmul.f32 %v585_v43, %v570_v22  ;;  %v506_v47 = vmul.f32 %v505_v44, %v490_v21 }
  0xcc   : > { %v532_v51 = vadd.f32 0.00028619796, %v531_v45  ;;  %v543_v54 = vadd.f32 0.001143296, %v542_v48  ;;  %v496_v58 = vadd.f32 0.05243302, %v495_v49 }
  0xcd   : > { %v587_v52 = vadd.f32 0.112945676, %v586_v46  ;;  %v507_v53 = vadd.f32 0.112945676, %v506_v47  ;;  %v576_v60 = vadd.f32 0.05243302, %v575_v50 }
  0xce   : > { %v533_v55 = vmul.f32 %v532_v51, %v1352_v42  ;;  %v544_v59 = vmul.f32 %v543_v54, %v1352_v42  ;;  %v497_v3 = vmul.f32 %v496_v58, %v490_v21  ;;  %v485_v58 = vmul.f32 0.5, %v1333_v16 }
  0xcf   : > { %v588_v56 = vmul.f32 %v587_v52, %v570_v22  ;;  %v508_v57 = vmul.f32 %v507_v53, %v490_v21  ;;  %v577_v5 = vmul.f32 %v576_v60, %v570_v22 }
  0xd0   : > { %v545_v63 = vadd.f32 0.014752088, %v544_v59  ;;  %v534_v0 = vadd.f32 0.0036580483, %v533_v55  ;;  %v498_v10 = vadd.f32 0.18741608, %v497_v3 }
  0xd1   : > { %v589_v61 = vadd.f32 0.4994258, %v588_v56  ;;  %v509_v62 = vadd.f32 0.4994258, %v508_v57  ;;  %v578_v11 = vadd.f32 0.18741608, %v577_v5 }
  0xd2   : > { %v546_v4 = vmul.f32 %v545_v63, %v1352_v42  ;;  %v535_v9 = vmul.f32 %v534_v0, %v1352_v42  ;;  %v499_v19 = vmul.f32 %v498_v10, %v490_v21 }
  0xd3   : > { %v590_v1 = vmul.f32 %v589_v61, %v570_v22  ;;  %v510_v2 = vmul.f32 %v509_v62, %v490_v21  ;;  %v579_v23 = vmul.f32 %v578_v11, %v570_v22  ;;  %v1208_v11 = vmov 128.0  }
  0xd4   : > { %v547_v8 = vadd.f32 0.112945676, %v546_v4  ;;  %v536_v13 = vadd.f32 0.05243302, %v535_v9  ;;  %v500_v31 = vadd.f32 1.1283791, %v499_v19 }
  0xd5   : > { %v591_v6 = vadd.f32 1.0, %v590_v1  ;;  %v511_v7 = vadd.f32 1.0, %v510_v2  ;;  %v580_v34 = vadd.f32 1.1283791, %v579_v23  ;;  %v484_v9 = vmul.f32 0.5, %v1345_v27 }
  0xd6   : > { %v548_v12 = vmul.f32 %v547_v8, %v1352_v42  ;;  %v537_v28 = vmul.f32 %v536_v13, %v1352_v42  ;;  %v501_v43 = vmul.f32 %v500_v31, %v1336_v17 }
  0xd7   : > { %1061 = vrcp.f32 %v591_v6  ;;  %v603_v35 = vand.u32 2147483648, %v591_v6  ;;  %v601_v38 = vand.u32 2147483647, %v591_v6  ;;  %v523_v21 = vand.u32 2147483648, %v511_v7 }
  0xd8   : > { %1063 = vrcp.f32 %v511_v7  ;;  %v549_v14 = vadd.f32 0.4994258, %v548_v12  ;;  %v538_v39 = vadd.f32 0.18741608, %v537_v28  ;;  %v521_v40 = vand.u32 2147483647, %v511_v7 }
  0xd9   : > { %vm597_vm2 = vweird.f32 %v591_v6  ;;  %v604_v44 = vor.u32 1.1754944e-38, %v603_v35  ;;  %vm517_vm4 = vweird.f32 %v511_v7  ;;  %v581_v46 = vmul.f32 %v580_v34, %v1339_v18 }
  0xda   : > { %v550_v24 = vmul.f32 %v549_v14, %v1352_v42  ;;  %vm602_vm5 = vcmp.eq.f32.partialorder %v601_v38, 8.507059e+37  ;;  %v524_v48 = vor.u32 1.1754944e-38, %v523_v21  ;;  %v539_v50 = vmul.f32 %v538_v39, %v1352_v42 }
  0xdb   : > { %vm522_vm7 = vcmp.eq.f32.partialorder %v521_v40, 8.507059e+37  ;;  %v483_v42 = vmul.f32 0.5, %v1331_v15 }
  0xdc   : > { %v551_v30 = vadd.f32 1.0, %v550_v24  ;;  %v540_v59 = vadd.f32 1.1283791, %v539_v50 }
  0xdd   : > { %v1062_v20 = vpop.eup %1061 }
  0xde   : > { %v1064_v25 = vpop.eup %1063  ;;  %v593_v26 = vmul.f32 %v1062_v20, %v591_v6  ;;  %1065 = vrcp.f32 %v551_v30  ;;  %vm598_vm0 = vweird.f32 %v1062_v20  ;;  %v563_v60 = vand.u32 2147483648, %v551_v30 }
  0xdf   : > { %v513_v29 = vmul.f32 %v1064_v25, %v511_v7  ;;  %vm518_vm1 = vweird.f32 %v1064_v25  ;;  %vm599_vm3 = vmor %vm597_vm2, %vm598_vm0  ;;  %v561_v63 = vand.u32 2147483647, %v551_v30  ;;  %vm557_vm9 = vweird.f32 %v551_v30 }
  0xe0   : > { %v594_v33 = vsub.f32 1.0, %v593_v26  ;;  %vm519_vm6 = vmor %vm517_vm4, %vm518_vm1  ;;  %v564_v4 = vor.u32 1.1754944e-38, %v563_v60  ;;  %v541_v5 = vmul.f32 %v540_v59, %v1348_v32  ;;  %1067 = vrcp.f32 %v1208_v11  ;;  %v714_v11 = vld [vmem:[%s382_s17] sm:$0xff] }
  0xe1   : > { %v514_v36 = vsub.f32 1.0, %v513_v29  ;;  %vm562_vm11 = vcmp.eq.f32.partialorder %v561_v63, 8.507059e+37 }
  0xe2   : > { %v595_v37 = vmul.f32 %v1062_v20, %v594_v33 }
  0xe3   : > { %v515_v22 = vmul.f32 %v1064_v25, %v514_v36 }
  0xe4   : > { %v596_v41 = vadd.f32 %v1062_v20, %v595_v37  ;;  %v1066_v49 = vpop.eup %1065 }
  0xe5   : > { %v516_v45 = vadd.f32 %v1064_v25, %v515_v22  ;;  %v553_v55 = vmul.f32 %v1066_v49, %v551_v30  ;;  %vm558_vm8 = vweird.f32 %v1066_v49 }
  0xe6   : > { %v600_v47 = vsel %vm599_vm3, %v1062_v20, %v596_v41  ;;  %vm559_vm10 = vmor %vm557_vm9, %vm558_vm8  ;;  %v1068_v12 = vpop.eup %1067  ;;  %vm735_vm8 = vcmask 7168  }
  0xe7   : > { %v605_v51 = vsel %vm602_vm5, %v604_v44, %v600_v47  ;;  %v520_v52 = vsel %vm519_vm6, %v1064_v25, %v516_v45  ;;  %v554_v57 = vsub.f32 1.0, %v553_v55  ;;  %v622_v13 = vmul.f32 128.0, %v1068_v12 }
  0xe8   : > { %v606_v53 = vmul.f32 %v605_v51, %v581_v46  ;;  %v525_v54 = vsel %vm522_vm7, %v524_v48, %v520_v52  ;;  %vm626_vm12 = vweird.f32 %v1068_v12  ;;  %v1058_v52 = vld [vmem:[%s1450_s4] ss:$0 sm:$0xff]  ;;  %vm717_vm6 = vcmp.ne.f32.partialorder %v714_v11, -100.0 }
  0xe9   : > { %v526_v17 = vmul.f32 %v525_v54, %v501_v43  ;;  %v555_v62 = vmul.f32 %v1066_v49, %v554_v57  ;;  %v623_v14 = vsub.f32 1.0, %v622_v13  ;;  %v716_v13 = vld [vmem:[%s382_s17 + $0x10] sm:$0xff] }
  0xea   : > { %v967_v56 = vclamps-f32 %v606_v53, 1.0  ;;  %vm719_vm9 = vcmp.ne.f32.partialorder %v716_v13, -100.0 }
  0xeb   : > { %v965_v18 = vclamps-f32 %v526_v17, 1.0  ;;  %v556_v2 = vadd.f32 %v1066_v49, %v555_v62  ;;  %v624_v19 = vmul.f32 %v1068_v12, %v623_v14  ;;  %v1059_v17 = vld [vmem:[%s1451_s5] ss:$0 sm:$0xff]  ;;  %v1209_v14 = vmov 0.0  }
  0xec   : > { %v611_v61 = vadd.f32 1.0, %v967_v56 }
  0xed   : > { %v609_v0 = vadd.f32 1.0, %v965_v18  ;;  %v560_v16 = vsel %vm559_vm10, %v1066_v49, %v556_v2  ;;  %v625_v20 = vadd.f32 %v1068_v12, %v624_v19  ;;  %v968_v19 = vsel %vm717_vm6, 1.0, %v1209_v14 }
  0xee   : > { %v614_v1 = vmul.f32 %v611_v61, %v485_v58  ;;  %v565_v6 = vsel %vm562_vm11, %v564_v4, %v560_v16  ;;  %v1060_v58 = vld [vmem:[%s1452_s6] ss:$0 sm:$0xff] }
  0xef   : > { %v612_v3 = vmul.f32 %v609_v0, %v483_v42  ;;  %v566_v7 = vmul.f32 %v565_v6, %v541_v5  ;;  %v627_v32 = vsel %vm626_vm12, %v1068_v12, %v625_v20  ;;  %v715_v12 = vld [vmem:[%s382_s17 + $0x8] sm:$0xff]  ;;  %s364_s17 = scalar_lea.vmem [#allocation6], %s925_s22  ;;  %s1121_s22 = scalar_lea.hbm %s1120_s30, 8 }
  0xf0   : > { %619 = vadd.xlane.f32.xlu1 %v614_v1  ;;  %vm718_vm7 = vcmp.ne.f32.partialorder %v715_v12, -100.0  ;;  %p1122_p0 = scmp.ne.s32.totalorder %s1120_s30, %s1121_s22  ;;  %p1127_p4 = scmp.lt.s32.totalorder %s1125_s10, %s1121_s22 }
  0xf1   : > { %615 = vadd.xlane.f32.xlu0 %v612_v3  ;;  %v966_v8 = vclamps-f32 %v566_v7, 1.0  ;;  %v969_v20 = vsel %vm718_vm7, 1.0, %v1209_v14 }
  0xf2   : > { %p1123_p1 = pnand %p1122_p0, %p1301_p5  ;;  %p1128_p7 = por %p1127_p4, %p1126_p3 }
  0xf3   : > { %v610_v10 = vadd.f32 1.0, %v966_v8 }
  0xf4   : > { %p1124_p2 = pneg %p1123_p1 }
  0xf5   : > { %v613_v15 = vmul.f32 %v610_v10, %v484_v9 }
  0xf6   : > { %p1129_p8 = pnand %p1128_p7, %p1124_p2 }
  0xf9   : > { %617 = vadd.xlane.f32.xlu0 %v613_v15 }
 0x163   : > { %v620_v27 = vpop.xlane.xlu1 %619 }
 0x164   : > { %v616_v23 = vpop.xlane.xlu0 %615  ;;  %v630_v31 = vmul.f32 %v627_v32, %v620_v27 }
 0x165   : > { %v628_v24 = vmul.f32 %v627_v32, %v616_v23  ;;  %v751_v23 = vsel %vm735_vm8, %v969_v20, 0.0 }
 0x166   : > { %v633_v34 = vsub.f32 %v614_v1, %v630_v31 }
 0x167   : > { %v631_v25 = vsub.f32 %v612_v3, %v628_v24  ;;  %v970_v24 = vsel %vm719_vm9, 1.0, %v1209_v14 }
 0x168   : > { %v636_v35 = vmul.f32 %v633_v34, %v633_v34 }
 0x169   : > { %v634_v26 = vmul.f32 %v631_v25, %v631_v25 }
 0x16b   : > { %637 = vadd.xlane.f32.xlu1 %v634_v26  ;;  %v753_v26 = vsel %vm735_vm8, %v970_v24, 0.0 }
 0x16c   : > { %v618_v28 = vpop.xlane.xlu0 %617 }
 0x16d   : > { %v629_v29 = vmul.f32 %v627_v32, %v618_v28 }
 0x16f   : > { %v632_v30 = vsub.f32 %v613_v15, %v629_v29  ;;  %v710_v29 = vstv %s709_s29  ;;  %s786_s29 = sshll.u32 %s364_s17, 4  ;;  %s787_s29 = int_to_ptr.vmem [resolvable:$true] %s786_s29 }
 0x171   : > { %v635_v33 = vmul.f32 %v632_v30, %v632_v30 }
 0x173   : > { %639 = vadd.xlane.f32.xlu2 %v635_v33 }
 0x17b   : > { %641 = vadd.xlane.f32.xlu2 %v636_v35 }
 0x1de   : > { %v638_v36 = vpop.xlane.xlu1 %637 }
 0x1df   : > { %v643_v37 = vmul.f32 %v638_v36, %v627_v32 }
 0x1e1   : > { %v646_v38 = vadd.f32 1e-05, %v643_v37 }
 0x1e3   : > { %1069 = vrsqrt.f32 %v646_v38  ;;  %vm655_vm14 = vweird.f32 %v646_v38 }
 0x1e6   : > { %v640_v21 = vpop.xlane.xlu2 %639 }
 0x1e7   : > { %v644_v39 = vmul.f32 %v640_v21, %v627_v32 }
 0x1e9   : > { %v1070_v22 = vpop.eup %1069  ;;  %v647_v41 = vadd.f32 1e-05, %v644_v39 }
 0x1ea   : > { %v650_v40 = vmul.f32 %v1070_v22, %v646_v38  ;;  %vm656_vm13 = vweird.f32 %v1070_v22 }
 0x1eb   : > { %1071 = vrsqrt.f32 %v647_v41  ;;  %vm657_vm15 = vmor %vm655_vm14, %vm656_vm13  ;;  %vm665_vm1 = vweird.f32 %v647_v41 }
 0x1ec   : > { %v651_v43 = vmul.f32 %v1070_v22, %v650_v40 }
 0x1ee   : > { %v652_v44 = vmul.f32 0.5, %v651_v43  ;;  %v642_v45 = vpop.xlane.xlu2 %641 }
 0x1ef   : > { %v645_v47 = vmul.f32 %v642_v45, %v627_v32  ;;  %v750_v32 = vsel %vm735_vm8, %v968_v19, 0.0 }
 0x1f0   : > { %v653_v46 = vsub.f32 1.5, %v652_v44 }
 0x1f1   : > { %v1072_v48 = vpop.eup %1071  ;;  %v648_v50 = vadd.f32 1e-05, %v645_v47 }
 0x1f2   : > { %v654_v49 = vmul.f32 %v1070_v22, %v653_v46  ;;  %v660_v51 = vmul.f32 %v1072_v48, %v647_v41  ;;  %vm666_vm0 = vweird.f32 %v1072_v48 }
 0x1f3   : > { %1073 = vrsqrt.f32 %v648_v50  ;;  %vm667_vm2 = vmor %vm665_vm1, %vm666_vm0  ;;  %vm675_vm4 = vweird.f32 %v648_v50 }
 0x1f4   : > { %v658_v53 = vsel %vm657_vm15, %v1070_v22, %v654_v49  ;;  %v661_v54 = vmul.f32 %v1072_v48, %v660_v51 }
 0x1f5   : > { %v679_v55 = vmul.f32 %v658_v53, %v631_v25  ;;  %v752_v25 = vadd.f32 %v751_v23, %v750_v32 }
 0x1f6   : > { %v662_v56 = vmul.f32 0.5, %v661_v54 }
 0x1f7   : > { %v686_v57 = vmul.f32 %v1058_v52, %v679_v55  ;;  %v754_v28 = vadd.f32 %v753_v26, %v752_v25 }
 0x1f8   : > { %v663_v59 = vsub.f32 1.5, %v662_v56 }
 0x1f9   : > { %v693_v18 = vadd.f32 %v1059_v17, %v686_v57  ;;  %v1074_v60 = vpop.eup %1073 }
 0x1fa   : > { %v664_v61 = vmul.f32 %v1072_v48, %v663_v59  ;;  %v670_v62 = vmul.f32 %v1074_v60, %v648_v50  ;;  %vm676_vm3 = vweird.f32 %v1074_v60 }
 0x1fb   : > { %v700_v63 = vmul.f32 %v1060_v58, %v693_v18  ;;  %vm677_vm5 = vmor %vm675_vm4, %vm676_vm3 }
 0x1fc   : > { %v671_v42 = vmul.f32 %v1074_v60, %v670_v62  ;;  %v668_v0 = vsel %vm667_vm2, %v1072_v48, %v664_v61 }
 0x1fd   : > { %703 = vadd.xlane.f32.xlu0 %v700_v63  ;;  %v680_v1 = vmul.f32 %v668_v0, %v632_v30 }
 0x1fe   : > { %v672_v2 = vmul.f32 0.5, %v671_v42 }
 0x1ff   : > { %v687_v3 = vmul.f32 %v1058_v52, %v680_v1 }
 0x200   : > { %v673_v4 = vsub.f32 1.5, %v672_v2 }
 0x201   : > { %v694_v5 = vadd.f32 %v1059_v17, %v687_v3 }
 0x202   : > { %v674_v16 = vmul.f32 %v1074_v60, %v673_v4 }
 0x203   : > { %v701_v6 = vmul.f32 %v1060_v58, %v694_v5 }
 0x204   : > { %v678_v7 = vsel %vm677_vm5, %v1074_v60, %v674_v16 }
 0x205   : > { %705 = vadd.xlane.f32.xlu1 %v701_v6  ;;  %v681_v8 = vmul.f32 %v678_v7, %v633_v34 }
 0x207   : > { %v688_v9 = vmul.f32 %v1058_v52, %v681_v8 }
 0x209   : > { %v695_v10 = vadd.f32 %v1059_v17, %v688_v9 }
 0x20b   : > { %v702_v15 = vmul.f32 %v1060_v58, %v695_v10 }
 0x20d   : > { %707 = vadd.xlane.f32.xlu2 %v702_v15  ;;  %755 = vadd.xlane.f32.xlu1 %v754_v28 }
 0x270   : > { %v704_v27 = vpop.xlane.xlu0 %703 }
 0x271   : > { %v711_v30 = vadd.f32 %v710_v29, %v704_v27 }
 0x273   : > { %v726_v34 = vsub.f32 %v711_v30, %v714_v11 }
 0x275   : > { %v729_v37 = vmul.f32 %v968_v19, %v726_v34 }
 0x277   : > { %v732_v22 = vmul.f32 %v729_v37, %v729_v37 }
 0x278   : > { %v706_v31 = vpop.xlane.xlu1 %705 }
 0x279   : > { %v712_v33 = vadd.f32 %v710_v29, %v706_v31  ;;  %v736_v45 = vsel %vm735_vm8, %v732_v22, 0.0 }
 0x27b   : > { %v727_v35 = vsub.f32 %v712_v33, %v715_v12 }
 0x27d   : > { %v730_v36 = vmul.f32 %v969_v20, %v727_v35 }
 0x27f   : > { %v733_v21 = vmul.f32 %v730_v36, %v730_v36 }
 0x280   : > { %v708_v38 = vpop.xlane.xlu2 %707  ;;  %v756_v49 = vpop.xlane.xlu1 %755 }
 0x281   : > { %v713_v39 = vadd.f32 %v710_v29, %v708_v38  ;;  %v737_v43 = vsel %vm735_vm8, %v733_v21, 0.0  ;;  %v757_v50 = vrot.slane %v756_v49, 4 }
 0x282   : > { %v738_v46 = vadd.f32 %v737_v43, %v736_v45 }
 0x283   : > { %v728_v40 = vsub.f32 %v713_v39, %v716_v13  ;;  %v758_v51 = vadd.f32 %v757_v50, %v756_v49 }
 0x285   : > { %v731_v41 = vmul.f32 %v970_v24, %v728_v40  ;;  %v759_v52 = vrot.slane %v758_v51, 2 }
 0x287   : > { %v734_v44 = vmul.f32 %v731_v41, %v731_v41  ;;  %v760_v17 = vadd.f32 %v759_v52, %v758_v51 }
 0x289   : > { %v739_v47 = vsel %vm735_vm8, %v734_v44, 0.0  ;;  %v761_v58 = vrot.slane %v760_v17, 1 }
 0x28a   : > { %v740_v48 = vadd.f32 %v739_v47, %v738_v46 }
 0x28b   : > { %v762_v60 = vadd.f32 %v761_v58, %v760_v17 }
 0x28c   : > { %741 = vadd.xlane.f32.xlu0 %v740_v48 }
 0x2ff   : > { %v742_v53 = vpop.xlane.xlu0 %741 }
 0x300   : > { %v743_v54 = vrot.slane %v742_v53, 4 }
 0x302   : > { %v744_v55 = vadd.f32 %v743_v54, %v742_v53 }
 0x304   : > { %v745_v56 = vrot.slane %v744_v55, 2 }
 0x306   : > { %v746_v57 = vadd.f32 %v745_v56, %v744_v55 }
 0x308   : > { %v747_v59 = vrot.slane %v746_v57, 1 }
 0x30a   : > { %v748_v18 = vadd.f32 %v747_v59, %v746_v57 }
 0x30c   : > { %994 = vpush %v748_v18 }
 0x30d   : > { %996 = vpush %v762_v60 }
 0x33d   : > { %s995_s7 = spop %994 }
 0x33e   : > { %v764_v61 = vstv %s995_s7  ;;  %s997_s24 = spop %996 }
 0x33f   : > { %765 = vst [vmem:[%s364_s17] sm:$0xff] %v764_v61  ;;  %v766_v62 = vstv %s997_s24 }
 0x340   : > { %767 = vst [vmem:[%s371_s27] sm:$0xff] %v766_v62 }
 0x341   : > { %1132 = shalt.err (!%p1129_p8)
}
 0x342   : > { %1002 = dma.vmem_to_hbm [thread:$0]  (%p1301_p5), %s787_s29, 128, %s789_s0, %s769_s25  }
 0x343   : > { %s774_s27 = scalar_lea.sflag [#allocation8], %s1390_s18  ;;  %s1147_s17 = sshra.s32 %s1402_s1, 4  ;;  %s1148_s17 = int_to_ptr.hbm [resolvable:$true] %s1147_s17 }
 0x344   : > { %s1149_s24 = scalar_lea.hbm %s1148_s17, 8  ;;  %s1153_s22 = scalar_lea.hbm %s1455_s9, 16 }
 0x345   : > { %p1150_p9 = scmp.ne.s32.totalorder %s1148_s17, %s1149_s24  ;;  %p1154_p12 = scmp.lt.s32.totalorder %s1148_s17, %s1455_s9 }
 0x346   : > { %p1155_p13 = scmp.lt.s32.totalorder %s1153_s22, %s1149_s24 }
 0x347   : > { %p1151_p10 = pnand %p1150_p9, %p1301_p5 }
 0x348   : > { %p1156_p0 = por %p1155_p13, %p1154_p12 }
 0x349   : > { %p1152_p11 = pneg %p1151_p10 }
 0x34b   : > { %p1157_p1 = pnand %p1156_p0, %p1152_p11 }
 0x34d   : > { %1160 = shalt.err (!%p1157_p1)
}
 0x34e   : > { %1003 = dma.vmem_to_hbm [thread:$0]  (%p1301_p5), %s1400_s28, 128, %s1402_s1, %s774_s27  }
 0x34f PF: > { %p1019_p2 = scmp.ge.s32.totalorder %s1203_s14, 2  ;;  %s814_s0 = sand.u32 1, %s1191_s11  }
 0x350   : > { %s815_s18 = scalar_lea.sflag [#allocation5], %s814_s0 }
 0x351   : > { %p1011_p3 = pnand %p1019_p2, %p1305_p6 }
 0x353   : > { %p1012_p4 = pneg %p1011_p3 }
 0x355   : > { %1182 = dma.done.wait (%p1012_p4), %s815_s18, 128  }
 0x356   : > { %1184 = vsyncadd (%p1012_p4), %s815_s18, 4294967168  ;;  %s825_s29 = scalar_lea.sflag [#allocation8], %s814_s0 }
 0x357   : > { %1186 = dma.done.wait (%p1012_p4), %s825_s29, 128  }
 0x358   : > { %1188 = vsyncadd (%p1012_p4), %s825_s29, 4294967168  ;;  %p25_p5 = scmp.ge.s32.totalorder %s1288_s16, 4   ;;  %s1462_s11 = smov %s1195_s12 }
 0x359   : > { %s1463_s12 = smov %s1199_s13  ;;  %s1464_s13 = smov %s1299_s19 }
 0x35a   : > { %s1465_s14 = smov %s1288_s16  ;;  %27 = sbr.rel (!%p25_p5) target bundleno = 10 (0xa), region = 112 }
 0x35f   :  { %831 = vsyncpa [#allocation4], 1 }
 0x360   :  { %833 = vsyncpa [#allocation4 + $0x1], 1 }
 0x361   :  { %834 = vsyncpa [#allocation5], 1 }
 0x362   :  { %836 = vsyncpa [#allocation5 + $0x1], 1 }
 0x363   :  { %837 = vsyncpa [#allocation8], 1 }
 0x364   :  { %839 = vsyncpa [#allocation8 + $0x1], 1 }

</bundles_post_ra>
